<compile_context>
chip_gen: v6e
topology: v6e:2x2x1
jax: 0.10.0
libtpu: 0.0.40
codegen_flags: <defaults>
</compile_context>

<pallas_src>
import jax
import jax.numpy as jnp
from jax.experimental import pallas as pl
from jax.experimental.pallas import tpu as pltpu


def _round_up(x: int, m: int) -> int:
    return ((x + m - 1) // m) * m


# ---------------------------------------------------------------------------
# Kernels
# ---------------------------------------------------------------------------

def _mlp_resident_kernel(x_ref, w1_ref, b1_ref, w2_ref, b2_ref, out_ref):
    """relu(x @ W1 + b1) @ W2 + b2 on one batch tile; weights VMEM-resident."""
    # In-kernel bf16 cast: halves x HBM traffic vs. a wrapper-side bf16 copy.
    x = x_ref[...].astype(jnp.bfloat16)
    h = jnp.dot(x, w1_ref[...], preferred_element_type=jnp.float32)
    h = jnp.maximum(h + b1_ref[...], 0.0).astype(jnp.bfloat16)
    # Feed h straight into the second matmul (no VMEM staging round trip).
    y = jnp.dot(h, w2_ref[...], preferred_element_type=jnp.float32)
    out_ref[...] = (y + b2_ref[...]).astype(out_ref.dtype)


def _mlp_ntiled_kernel(x_ref, w1_ref, b1_ref, w2_ref, b2_ref, out_ref, h_ref):
    """Same math with W2 / b2 / out tiled along D_out (grid axis 1).

    The ReLU output for the current batch tile is computed once (j == 0) and
    cached in a bf16 VMEM scratch that persists across the D_out steps.
    """
    @pl.when(pl.program_id(1) == 0)
    def _():
        x = x_ref[...].astype(jnp.bfloat16)
        h = jnp.dot(x, w1_ref[...], preferred_element_type=jnp.float32)
        h_ref[...] = jnp.maximum(h + b1_ref[...], 0.0).astype(jnp.bfloat16)

    y = jnp.dot(h_ref[...], w2_ref[...], preferred_element_type=jnp.float32)
    out_ref[...] = (y + b2_ref[...]).astype(out_ref.dtype)


# ---------------------------------------------------------------------------
# Parameter preparation (done once at model init, not per forward call)
# ---------------------------------------------------------------------------

def prepare_params(w1, b1, w2, b2):
    """Pad feature dims to multiples of 128 and cast weights to bf16, once."""
    d_in, h = w1.shape
    d_out = w2.shape[1]
    d_in_p, h_p, d_out_p = (_round_up(d, 128) for d in (d_in, h, d_out))

    w1_p = jnp.zeros((d_in_p, h_p), jnp.bfloat16).at[:d_in, :h].set(
        w1.astype(jnp.bfloat16))
    w2_p = jnp.zeros((h_p, d_out_p), jnp.bfloat16).at[:h, :d_out].set(
        w2.astype(jnp.bfloat16))
    b1_p = jnp.zeros((1, h_p), jnp.float32).at[:, :h].set(
        b1.reshape(1, h).astype(jnp.float32))
    b2_p = jnp.zeros((1, d_out_p), jnp.float32).at[:, :d_out].set(
        b2.reshape(1, d_out).astype(jnp.float32))
    return dict(w1=w1_p, b1=b1_p, w2=w2_p, b2=b2_p,
                d_in=d_in, h=h, d_out=d_out)


# ---------------------------------------------------------------------------
# Sizing heuristics
# ---------------------------------------------------------------------------

def _vmem_budget_bytes() -> int:
    """Generation-aware VMEM budget (~96 MiB v5e/v6e, ~48 MiB v7x)."""
    try:
        cap = int(pltpu.get_tpu_info().vmem_capacity_bytes)
    except Exception:
        cap = 64 << 20          # assume the smallest (v7x-like) VMEM
    return max(16 << 20, (cap * 3) // 4)   # ~25% headroom for Mosaic scratch


def _choose_tm(B: int) -> int:
    # Prefer big tiles (better HBM roofline fraction) but keep >= 2 grid
    # steps when the batch allows it (megacore sharding on v7x).
    for tm in (512, 256, 128):
        if B >= 2 * tm:
            return tm
    return 128


def _resident_vmem_bytes(tm, d_in_p, h_p, d_out_p, x_bytes, out_bytes):
    return (2 * tm * d_in_p * x_bytes        # x tiles (double-buffered)
            + 2 * d_in_p * h_p * 2           # W1 (counted double-buffered)
            + 2 * h_p * d_out_p * 2          # W2 (counted double-buffered)
            + 2 * (h_p + d_out_p) * 4        # biases
            + 2 * tm * d_out_p * out_bytes   # out tiles (double-buffered)
            + tm * h_p * 6                   # layer-1 f32 value + bf16 temp
            + (2 << 20))                     # internal scratch margin


def _ntiled_vmem_bytes(tm, tn, d_in_p, h_p, x_bytes, out_bytes):
    return (2 * tm * d_in_p * x_bytes
            + 2 * d_in_p * h_p * 2           # W1 resident
            + 2 * h_p * tn * 2               # W2 N-slice (double-buffered)
            + 2 * (h_p + tn) * 4
            + 2 * tm * tn * out_bytes
            + tm * h_p * 6                   # h scratch (bf16) + f32 temp
            + (2 << 20))


# ---------------------------------------------------------------------------
# Forward
# ---------------------------------------------------------------------------

def hosta_forward(x, params, *, tm=None, out_dtype=jnp.bfloat16,
                  force_ntiled=False):
    """Fused 2-layer MLP forward.  x: [B, D_in]; returns [B, D_out] out_dtype."""
    B, d_in = x.shape
    assert d_in == params["d_in"], "input feature dim mismatch"
    w1_p, b1_p, w2_p, b2_p = params["w1"], params["b1"], params["w2"], params["b2"]
    d_in_p, h_p = w1_p.shape
    d_out_p = w2_p.shape[1]
    d_out = params["d_out"]

    # Pad x's feature dim only when required; never pad the batch dim.
    # When padding is needed we cast to bf16 in the same pass (2B write +
    # 2B kernel read beats a 4B kernel read of a padded f32 copy).
    if d_in != d_in_p:
        x_in = jnp.zeros((B, d_in_p), jnp.bfloat16).at[:, :d_in].set(
            x.astype(jnp.bfloat16))
    else:
        x_in = x                            # native dtype; cast in-kernel
    x_bytes = x_in.dtype.itemsize
    out_bytes = jnp.dtype(out_dtype).itemsize

    budget = _vmem_budget_bytes()
    tm = tm or _choose_tm(B)
    tm = min(tm, _round_up(max(B, 1), 8))   # never exceed the batch extent
    while tm > 128 and _resident_vmem_bytes(
            tm, d_in_p, h_p, d_out_p, x_bytes, out_bytes) > budget:
        tm //= 2

    use_ntiled = (force_ntiled or
                  _resident_vmem_bytes(tm, d_in_p, h_p, d_out_p,
                                       x_bytes, out_bytes) > budget)
    n_b = pl.cdiv(B, tm)

    if not use_ntiled:
        grid_spec = pltpu.PrefetchScalarGridSpec(
            num_scalar_prefetch=0,
            grid=(n_b,),
            in_specs=[
                pl.BlockSpec((tm, d_in_p), lambda i: (i, 0)),     # x: batch-tiled
                pl.BlockSpec((d_in_p, h_p), lambda i: (0, 0)),    # W1 resident
                pl.BlockSpec((1, h_p), lambda i: (0, 0)),         # b1 resident
                pl.BlockSpec((h_p, d_out_p), lambda i: (0, 0)),   # W2 resident
                pl.BlockSpec((1, d_out_p), lambda i: (0, 0)),     # b2 resident
            ],
            out_specs=pl.BlockSpec((tm, d_out_p), lambda i: (i, 0)),
        )
        kernel = _mlp_resident_kernel
        dim_sem = ("parallel",)
    else:
        # Largest tn in {512, 256, 128} dividing D_out_p that fits the budget.
        tn = 128
        for cand in (512, 256, 128):
            if d_out_p % cand == 0 and _ntiled_vmem_bytes(
                    tm, cand, d_in_p, h_p, x_bytes, out_bytes) <= budget:
                tn = cand
                break
        grid_spec = pltpu.PrefetchScalarGridSpec(
            num_scalar_prefetch=0,
            grid=(n_b, d_out_p // tn),
            in_specs=[
                pl.BlockSpec((tm, d_in_p), lambda i, j: (i, 0)),
                pl.BlockSpec((d_in_p, h_p), lambda i, j: (0, 0)),
                pl.BlockSpec((1, h_p), lambda i, j: (0, 0)),
                pl.BlockSpec((h_p, tn), lambda i, j: (0, j)),     # W2: N-tiled
                pl.BlockSpec((1, tn), lambda i, j: (0, j)),
            ],
            out_specs=pl.BlockSpec((tm, tn), lambda i, j: (i, j)),
            scratch_shapes=[pltpu.VMEM((tm, h_p), jnp.bfloat16)],
        )
        kernel = _mlp_ntiled_kernel
        dim_sem = ("parallel", "arbitrary")

    out_p = pl.pallas_call(
        kernel,
        out_shape=jax.ShapeDtypeStruct((B, d_out_p), out_dtype),
        grid_spec=grid_spec,
        compiler_params=pltpu.CompilerParams(
            dimension_semantics=dim_sem,
            vmem_limit_bytes=int(budget),
        ),
    )(x_in, w1_p, b1_p, w2_p, b2_p)

    return out_p if d_out == d_out_p else out_p[:, :d_out]


# ---------------------------------------------------------------------------
# Demo / self-test
# ---------------------------------------------------------------------------

if __name__ == "__main__":
    root_key = jax.random.PRNGKey(0)

    def run_case(B, d_in, h, d_out, force_ntiled):
        ks = jax.random.split(jax.random.fold_in(root_key, B * 7 + d_in), 5)
        x = jax.random.normal(ks[0], (B, d_in), jnp.float32)
        w1 = jax.random.normal(ks[1], (d_in, h), jnp.float32) * 0.1
        b1 = jax.random.normal(ks[2], (1, h), jnp.float32) * 0.01
        w2 = jax.random.normal(ks[3], (h, d_out), jnp.float32) * 0.1
        b2 = jax.random.normal(ks[4], (1, d_out), jnp.float32) * 0.01

        params = prepare_params(w1, b1, w2, b2)          # once, at "init"
        y = jax.block_until_ready(
            hosta_forward(x, params, force_ntiled=force_ntiled))
        assert y.shape == (B, d_out)

        # bf16-operand / f32-accumulate matched reference.
        hh = jnp.dot(x.astype(jnp.bfloat16), w1.astype(jnp.bfloat16),
                     preferred_element_type=jnp.float32) + b1
        hh = jnp.maximum(hh, 0.0).astype(jnp.bfloat16)
        y_ref = jnp.dot(hh, w2.astype(jnp.bfloat16),
                        preferred_element_type=jnp.float32) + b2
        assert jnp.allclose(y.astype(jnp.float32), y_ref, atol=2e-2, rtol=2e-2), \
            "mismatch vs bf16-matched reference"

        # Loose check against pure-f32 math (bf16 operand rounding tolerated).
        y_f32 = jnp.maximum(x @ w1 + b1, 0.0) @ w2 + b2
        assert jnp.allclose(y.astype(jnp.float32), y_f32, atol=5e-2, rtol=5e-2), \
            "mismatch vs f32 reference"

    # Unaligned features + partial batch tile: resident path, then the forced
    # D_out-tiled fallback path (validates both kernels compile and agree).
    run_case(300, 32, 64, 16, force_ntiled=False)
    run_case(300, 32, 64, 16, force_ntiled=True)
    # 128-aligned features: zero-copy x path (no wrapper pad/cast at all).
    run_case(256, 128, 256, 128, force_ntiled=False)

    print("KERNEL_OK")
</pallas_src>

<mosaic_0001>
module attributes {stable_mosaic.version = 11 : i64} {
  func.func @_mlp_resident_kernel(%arg0: i32, %arg1: memref<128x128xbf16, #tpu.memory_space<vmem>>, %arg2: memref<128x128xbf16, #tpu.memory_space<vmem>>, %arg3: memref<1x128xf32, #tpu.memory_space<vmem>>, %arg4: memref<128x128xbf16, #tpu.memory_space<vmem>>, %arg5: memref<1x128xf32, #tpu.memory_space<vmem>>, %arg6: memref<128x128xbf16, #tpu.memory_space<vmem>>) attributes {dimension_semantics = [#tpu.dimension_semantics<parallel>], iteration_bounds = array<i64: 3>, scalar_prefetch = 0 : i64, scratch_operands = 0 : i64, tpu.core_type = #tpu.core_type<tc>, window_params = [{transform_indices = @transform_0, window_bounds = array<i64: 128, 128>}, {pipeline_mode = #tpu.pipeline_mode<synchronous>, transform_indices = @transform_1, window_bounds = array<i64: 128, 128>}, {pipeline_mode = #tpu.pipeline_mode<synchronous>, transform_indices = @transform_2, window_bounds = array<i64: 1, 128>}, {pipeline_mode = #tpu.pipeline_mode<synchronous>, transform_indices = @transform_3, window_bounds = array<i64: 128, 128>}, {pipeline_mode = #tpu.pipeline_mode<synchronous>, transform_indices = @transform_4, window_bounds = array<i64: 1, 128>}, {transform_indices = @transform_5, window_bounds = array<i64: 128, 128>}]} {
    %c0 = arith.constant 0 : index
    %c0_0 = arith.constant 0 : index
    %0 = vector.load %arg1[%c0, %c0_0] : memref<128x128xbf16, #tpu.memory_space<vmem>>, vector<128x128xbf16>
    %c0_1 = arith.constant 0 : index
    %c0_2 = arith.constant 0 : index
    %1 = vector.load %arg2[%c0_1, %c0_2] : memref<128x128xbf16, #tpu.memory_space<vmem>>, vector<128x128xbf16>
    %cst = arith.constant dense<0.000000e+00> : vector<128x128xf32>
    %2 = tpu.matmul %0, %1, %cst {dimension_numbers = #tpu.dot_dimension_numbers<[1], [0], [0], [1], [0, 0, 1, 1], [], []>} : vector<128x128xbf16>, vector<128x128xbf16>, vector<128x128xf32> -> vector<128x128xf32>
    %c0_3 = arith.constant 0 : index
    %c0_4 = arith.constant 0 : index
    %3 = vector.load %arg3[%c0_3, %c0_4] : memref<1x128xf32, #tpu.memory_space<vmem>>, vector<1x128xf32>
    %4 = vector.broadcast %3 : vector<1x128xf32> to vector<128x128xf32>
    %5 = arith.addf %2, %4 : vector<128x128xf32>
    %cst_5 = arith.constant 0.000000e+00 : f32
    %6 = vector.broadcast %cst_5 : f32 to vector<128x128xf32>
    %7 = arith.maximumf %5, %6 : vector<128x128xf32>
    %8 = arith.truncf %7 : vector<128x128xf32> to vector<128x128xbf16>
    %c0_6 = arith.constant 0 : index
    %c0_7 = arith.constant 0 : index
    %9 = vector.load %arg4[%c0_6, %c0_7] : memref<128x128xbf16, #tpu.memory_space<vmem>>, vector<128x128xbf16>
    %cst_8 = arith.constant dense<0.000000e+00> : vector<128x128xf32>
    %10 = tpu.matmul %8, %9, %cst_8 {dimension_numbers = #tpu.dot_dimension_numbers<[1], [0], [0], [1], [0, 0, 1, 1], [], []>} : vector<128x128xbf16>, vector<128x128xbf16>, vector<128x128xf32> -> vector<128x128xf32>
    %c0_9 = arith.constant 0 : index
    %c0_10 = arith.constant 0 : index
    %11 = vector.load %arg5[%c0_9, %c0_10] : memref<1x128xf32, #tpu.memory_space<vmem>>, vector<1x128xf32>
    %12 = vector.broadcast %11 : vector<1x128xf32> to vector<128x128xf32>
    %13 = arith.addf %10, %12 : vector<128x128xf32>
    %14 = arith.truncf %13 : vector<128x128xf32> to vector<128x128xbf16>
    %c0_11 = arith.constant 0 : index
    %c0_12 = arith.constant 0 : index
    %15 = vector.load %arg6[%c0_11, %c0_12] : memref<128x128xbf16, #tpu.memory_space<vmem>>, vector<128x128xbf16>
    tpu.vector_store %arg6[%c0_11, %c0_12], %14 {strides = array<i32>} : memref<128x128xbf16, #tpu.memory_space<vmem>>, vector<128x128xbf16>,
    return
  }
  func.func @transform_0(%arg0: i32) -> (i32, i32) {
    %c0_i32 = arith.constant 0 : i32
    %c0_i32_0 = arith.constant 0 : i32
    return %arg0, %c0_i32 : i32, i32
  }
  func.func @transform_1(%arg0: i32) -> (i32, i32) {
    %c0_i32 = arith.constant 0 : i32
    %c0_i32_0 = arith.constant 0 : i32
    %c0_i32_1 = arith.constant 0 : i32
    return %c0_i32, %c0_i32_0 : i32, i32
  }
  func.func @transform_2(%arg0: i32) -> (i32, i32) {
    %c0_i32 = arith.constant 0 : i32
    %c0_i32_0 = arith.constant 0 : i32
    %c0_i32_1 = arith.constant 0 : i32
    return %c0_i32, %c0_i32_0 : i32, i32
  }
  func.func @transform_3(%arg0: i32) -> (i32, i32) {
    %c0_i32 = arith.constant 0 : i32
    %c0_i32_0 = arith.constant 0 : i32
    %c0_i32_1 = arith.constant 0 : i32
    return %c0_i32, %c0_i32_0 : i32, i32
  }
  func.func @transform_4(%arg0: i32) -> (i32, i32) {
    %c0_i32 = arith.constant 0 : i32
    %c0_i32_0 = arith.constant 0 : i32
    %c0_i32_1 = arith.constant 0 : i32
    return %c0_i32, %c0_i32_0 : i32, i32
  }
  func.func @transform_5(%arg0: i32) -> (i32, i32) {
    %c0_i32 = arith.constant 0 : i32
    %c0_i32_0 = arith.constant 0 : i32
    return %arg0, %c0_i32 : i32, i32
  }
}

</mosaic_0001>

<bundles_post_ra>
// kernel: tpu_custom_call.1
= control target key start
LH: loop header
LB: loop body
LE: loop exit
PB: predicated region body
PF: predicated region fallthrough
CT: control target
= control target key end

     0   :  { %10 = vsyncpa [#allocation3], 0  ;;  %s1652_s0 = inlined_call_operand.hbm [shape: bf16[300,128], index: 0, kind: input, shape index: {}]   ;;  %s1653_s1 = inlined_call_operand.hbm [shape: bf16[128,128], index: 1, kind: input, shape index: {}]   ;;  %s1654_s2 = inlined_call_operand.vmem [shape: f32[1,128], index: 2, kind: input, shape index: {}]   ;;  %s1655_s3 = inlined_call_operand.hbm [shape: bf16[128,128], index: 3, kind: input, shape index: {}]   ;;  %s1656_s4 = inlined_call_operand.vmem [shape: f32[1,128], index: 4, kind: input, shape index: {}]   ;;  %s1657_s5 = inlined_call_operand.hbm [shape: bf16[300,128], index: 5, kind: output, shape index: {}]  }
   0x1   :  { %12 = vsyncpa [#allocation3 + $0x1], 0 }
   0x2   :  { %13 = vsyncpa [#allocation6], 0 }
   0x3   :  { %14 = vsyncpa [#allocation4], 0 }
   0x4   :  { %16 = vsyncpa [#allocation4 + $0x1], 0  ;;  %s1412_s18 = smov 0   ;;  %s1414_s19 = smov 0  }
   0x5   :  { %s1416_s20 = smov 0   ;;  %s1418_s21 = smov 0  }
   0x6 LB: > { %s1433_s22 = sadd.s32 4294967295, %s1370_s21   ;;  %s905_s23 = sadd.s32 4294967294, %s1370_s21   ;;  %s1370_s21 = sphi %s1418_s21, %s1674_s21   ;;  %s1366_s20 = sphi %s1416_s20, %s1673_s20   ;;  %s1362_s19 = sphi %s1414_s19, %s1672_s19   ;;  %s1358_s18 = sphi %s1412_s18, %s1671_s18  }
   0x7   : > { %s1437_s24 = sadd.s32 1, %s1370_s21   ;;  %s29_s25 = sadd.s32 1, %s1366_s20 }
   0x8   : > { %s26_s26 = ssub.s32 %s1370_s21, %s1437_s24  ;;  %p36_p0 = scmp.ne.s32.totalorder %s1366_s20, %s1362_s19 }
   0x9   : > { %p27_p1 = scmp.eq.s32.totalorder %s26_s26, 0  ;;  %p37_p2 = scmp.eq.s32.totalorder %s1370_s21, 0 }
   0xa   : > { %p42_p3 = scmp.ne.s32.totalorder %s1362_s19, %s1358_s18  ;;  %p1658_p4 = scmp.eq.s32.totalorder %s1433_s22, 0 }
   0xb   : > { %s1449_s27 = scalar_select %p27_p1, %s1366_s20, %s29_s25  }
   0xc   : > { %p1451_p5 = por %p37_p2, %p36_p0  ;;  %p1457_p6 = por %p1658_p4, %p42_p3 }
   0xd   : > { %p150_p7 = scmp.eq.s32.totalorder %s1433_s22, 2  ;;  %p156_p8 = scmp.eq.s32.totalorder %s905_s23, 2 }
   0xe   : > { %s1661_s29 = scalar_select %p1457_p6, 1, 0 }
   0xf   : > { %p906_p9 = scmp.ge.s32.totalorder %s1370_s21, 1  ;;  %p163_p10 = scmp.lt.s32.totalorder %s1370_s21, 4 }
  0x10   : > { %p1464_p11 = por %p150_p7, %p36_p0  ;;  %p1468_p12 = por %p156_p8, %p42_p3 }
  0x11   : > { %p1472_p13 = pnand %p906_p9, %p163_p10  ;;  %s1372_s8 = smov [#allocation5]  }
  0x12   : > { %s1662_s30 = scalar_select %p1464_p11, 1, 0 }
  0x13   : > { %s1663_s6 = scalar_select %p1468_p12, 1, 0 }
  0x14   : > { %p1144_p1 = pneg %p1472_p13  ;;  %s175_s9 = sshll.u32 %s1372_s8, 4  ;;  %s176_s9 = int_to_ptr.vmem [resolvable:$true] %s175_s9 }
  0x15   : > { %s1373_s11 = smov [#allocation7]   ;;  %s1235_s13 = scalar_lea.vmem %s176_s9, 1024 }
  0x16   : > { %p1480_p2 = pnand %p1144_p1, %p1658_p4  ;;  %s191_s12 = sshll.u32 %s1373_s11, 4  ;;  %s192_s12 = int_to_ptr.vmem [resolvable:$true] %s191_s12 }
  0x17   : > { %p1236_p3 = scmp.ne.s32.totalorder %s176_s9, %s1235_s13  ;;  %p1243_p9 = scmp.lt.s32.totalorder %s176_s9, %s176_s9 }
  0x18   : > { %p1226_p0 = pneg %p1480_p2  ;;  %p1244_p10 = scmp.lt.s32.totalorder %s1235_s13, %s1235_s13 }
  0x1a   : > { %p1238_p7 = pnand %p1236_p3, %p1226_p0  ;;  %p1245_p12 = por %p1244_p10, %p1243_p9 }
  0x1c   : > { %p1239_p8 = pneg %p1238_p7 }
  0x1e   : > { %p1246_p1 = pnand %p1245_p12, %p1239_p8 }
  0x20   : > { %1249 = shalt.err (!%p1246_p1)
}
  0x21   : > { %s1374_s14 = smov 64   ;;  %s1375_s15 = smov 4  }
  0x22   : > { %1147 = dma.hbm_to_vmem [thread:$0]  (!%p1480_p2), %s1653_s1, 1024, %s176_s9, [#allocation6], %s1374_s14, %s1374_s14, %s1375_s15  }
  0x23   : > { %s1261_s23 = scalar_lea.vmem %s192_s12, 1024  ;;  %p1269_p11 = scmp.lt.s32.totalorder %s192_s12, %s192_s12 }
  0x24   : > { %p1262_p4 = scmp.ne.s32.totalorder %s192_s12, %s1261_s23  ;;  %p1270_p6 = scmp.lt.s32.totalorder %s1261_s23, %s1261_s23 }
  0x26   : > { %p1264_p3 = pnand %p1262_p4, %p1226_p0  ;;  %p1271_p9 = por %p1270_p6, %p1269_p11 }
  0x28   : > { %p1265_p7 = pneg %p1264_p3 }
  0x2a   : > { %p1272_p12 = pnand %p1271_p9, %p1265_p7 }
  0x2c   : > { %1275 = shalt.err (!%p1272_p12)
}
  0x2d   : > { %1150 = dma.hbm_to_vmem [thread:$0]  (!%p1480_p2), %s1655_s3, 1024, %s192_s12, [#allocation6], %s1374_s14, %s1374_s14, %s1375_s15  }
  0x2e   : > { %p909_p8 = scmp.ge.s32.totalorder %s1370_s21, 3 }
  0x30   : > { %204 = sbr.rel (%p909_p8) target bundleno = 85 (0x55), region = 32 }
  0x35   : > { %207 = sbr.rel (!%p1451_p5) target bundleno = 85 (0x55), region = 36  ;;  %s208_s8 = sand.u32 (%p1451_p5), 1, %s1366_s20  }
  0x36   : > { %s911_s9 = sshll.u32 (%p1451_p5), %s1370_s21, 4  ;;  %s910_s11 = sshll.u32 (%p1451_p5), %s208_s8, 6 }
  0x37   : > { %s214_s13 = ssub.s32 (%p1451_p5), 38, %s911_s9  ;;  %s1510_s17 = scalar_lea.sflag (%p1451_p5), [#allocation3], %s208_s8 }
  0x38   : > { %p215_p4 = scmp.lt.s32.totalorder (%p1451_p5), %s214_s13, 16  ;;  %s212_s12 = scalar_lea.vmem (%p1451_p5), [#allocation2], %s910_s11 }
  0x3a   : > { %s1676_s13 = smov (!%p215_p4, %s214_s13), 16 }
  0x3b   : > { %s1507_s16 = sshll.u32 %s1676_s13, 6 }
  0x3c   : > { %s219_s10 = ssub.s32 1024, %s1507_s16 }
  0x3d   : > { %220 = vsyncadd %s1510_s17, %s219_s10  ;;  %p913_p5 = scmp.ne.s32.totalorder %s1507_s16, 0  ;;  %s973_s28 = sshll.u32 %s1370_s21, 10 }
  0x3e   : > { %s1518_s23 = scalar_lea.hbm %s1652_s0, %s973_s28  ;;  %s225_s25 = sshll.u32 %s212_s12, 4  ;;  %s1520_s25 = int_to_ptr.vmem [resolvable:$true] %s225_s25 }
  0x3f   : > { %s1276_s26 = scalar_lea.hbm %s1518_s23, %s1507_s16  ;;  %s1280_s11 = scalar_lea.hbm %s1652_s0, 2432 }
  0x40   : > { %p1277_p6 = scmp.ne.s32.totalorder %s1518_s23, %s1276_s26  ;;  %p1281_p0 = scmp.lt.s32.totalorder %s1518_s23, %s1652_s0 }
  0x41   : > { %p1282_p10 = scmp.lt.s32.totalorder %s1280_s11, %s1276_s26 }
  0x42   : > { %p1278_p11 = pnand %p1277_p6, %p913_p5 }
  0x43   : > { %p1283_p1 = por %p1282_p10, %p1281_p0 }
  0x44   : > { %p1279_p2 = pneg %p1278_p11 }
  0x46   : > { %p1284_p3 = pnand %p1283_p1, %p1279_p2 }
  0x48   : > { %1287 = shalt.err (!%p1284_p3)
}
  0x49   : > { %s1288_s12 = scalar_lea.vmem %s1520_s25, %s1507_s16  ;;  %s1376_s28 = smov [#allocation2]  }
  0x4a   : > { %p1289_p7 = scmp.ne.s32.totalorder %s1520_s25, %s1288_s12  ;;  %s1292_s14 = sshll.u32 %s1376_s28, 4  ;;  %s1293_s14 = int_to_ptr.vmem [resolvable:$false] %s1292_s14 }
  0x4b   : > { %s1294_s15 = scalar_lea.vmem %s1293_s14, 2048  ;;  %p1295_p8 = scmp.lt.s32.totalorder %s1520_s25, %s1293_s14 }
  0x4c   : > { %p1290_p9 = pnand %p1289_p7, %p913_p5  ;;  %p1296_p4 = scmp.lt.s32.totalorder %s1294_s15, %s1288_s12 }
  0x4e   : > { %p1291_p12 = pneg %p1290_p9  ;;  %p1297_p6 = por %p1296_p4, %p1295_p8 }
  0x50   : > { %p1298_p11 = pnand %p1297_p6, %p1291_p12 }
  0x52   : > { %1301 = shalt.err (!%p1298_p11)
}
  0x53   : > { %s1377_s26 = smov 64   ;;  %s1378_s8 = smov 4  }
  0x54   : > { %231 = dma.hbm_to_vmem [thread:$0]  (%p913_p5), %s1518_s23, %s1507_s16, %s1520_s25, %s1510_s17, %s1377_s26, %s1377_s26, %s1378_s8  }
  0x55 PF: > { %237 = sbr.rel (%p1472_p13) target bundleno = 588 (0x24c), region = 40  ;;  %s1549_s9 = sand.u32 (!%p1472_p13), 1, %s1362_s19  }
  0x56   : > { %s918_s11 = sshll.u32 (!%p1472_p13), %s1549_s9, 6  ;;  %s240_s13 = scalar_lea.sflag (!%p1472_p13), [#allocation3], %s1549_s9 }
  0x57   : > { %s1555_s10 = scalar_lea.vmem (!%p1472_p13), [#allocation2], %s918_s11  ;;  %p1666_p2 = scmp.ne.s32.totalorder (!%p1472_p13), %s1661_s29, 0 }
  0x5a   : > { %1345 = dma.done.wait (%p1666_p2), %s240_s13, 1024  }
  0x5b   : > { %1347 = vsyncadd (%p1666_p2), %s240_s13, 4294966272  ;;  %p1667_p5 = scmp.eq.s32.totalorder %s1433_s22, 0 }
  0x5d   : > { %1349 = dma.done.wait (%p1667_p5), [#allocation6], 2048   ;;  %p1668_p13 = pmov %p1667_p5 }
  0x5e   : > { %v1200_v0 = vld [vmem:[#allocation5 + $0x38] sm:$0xff]   ;;  %v1201_v1 = vld [vmem:[#allocation5 + $0x30] sm:$0xff]   ;;  %v1202_v2 = vld [vmem:[#allocation5 + $0x28] sm:$0xff]   ;;  %s1581_s23 = scalar_lea.vmem [#allocation8], %s918_s11  ;;  %s794_s25 = scalar_lea.sflag [#allocation4], %s1549_s9 }
  0x5f   : > { %1351 = vsyncadd (%p1668_p13), [#allocation6], 4294965248  ;;  %1070 = vmatprep.subr.bf16.mxu0 %v1200_v0  ;;  %v1203_v3 = vld [vmem:[#allocation5 + $0x20] sm:$0xff]   ;;  %v1204_v5 = vld [vmem:[#allocation5 + $0x18] sm:$0xff]   ;;  %p1669_p0 = scmp.ne.s32.totalorder %s1662_s30, 0 }
  0x60   : > { %1071 = vmatpush3.bf16.msra.mxu0 %v1200_v0  ;;  %v1208_v4 = vld [vmem:[%s1555_s10] sm:$0xff]   ;;  %v1205_v6 = vld [vmem:[#allocation5 + $0x10] sm:$0xff]   ;;  %v1216_v7 = vld [vmem:[#allocation7 + $0x38] sm:$0xff]   ;;  %s965_s12 = sshll.u32 (%p1669_p0), %s1433_s22, 4 }
  0x61   : > { %1072 = vmatprep.subr.bf16.mxu0 %v1201_v1  ;;  %1086 = vmatprep.mubr.bf16.mxu0 %v1208_v4  ;;  %v1217_v8 = vld [vmem:[#allocation7 + $0x30] sm:$0xff]   ;;  %v1206_v9 = vld [vmem:[#allocation5 + $0x8] sm:$0xff]   ;;  %v1207_v11 = vld [vmem:[#allocation5] sm:$0xff]   ;;  %s802_s28 = ssub.s32 (%p1669_p0), 38, %s965_s12 }
  0x62   : > { %1102 = vmatprep.subr.bf16.mxu1 %v1216_v7  ;;  %v1218_v10 = vld [vmem:[#allocation7 + $0x28] sm:$0xff]   ;;  %v1219_v12 = vld [vmem:[#allocation7 + $0x20] sm:$0xff]   ;;  %v1220_v13 = vld [vmem:[#allocation7 + $0x18] sm:$0xff]   ;;  %p803_p10 = scmp.lt.s32.totalorder (%p1669_p0), %s802_s28, 16 }
  0x63   : > { %1103 = vmatpush3.bf16.msra.mxu1 %v1216_v7  ;;  %v1209_v14 = vld [vmem:[%s1555_s10 + $0x8] sm:$0xff]   ;;  %v1210_v15 = vld [vmem:[%s1555_s10 + $0x10] sm:$0xff]   ;;  %v1211_v16 = vld [vmem:[%s1555_s10 + $0x18] sm:$0xff]  }
  0x64   : > { %1073 = vmatpush3.bf16.msra.mxu0 %v1201_v1  ;;  %1104 = vmatprep.subr.bf16.mxu1 %v1217_v8  ;;  %v1212_v17 = vld [vmem:[%s1555_s10 + $0x20] sm:$0xff]   ;;  %v1213_v18 = vld [vmem:[%s1555_s10 + $0x28] sm:$0xff]   ;;  %v1214_v19 = vld [vmem:[%s1555_s10 + $0x30] sm:$0xff]  }
  0x65   : > { %1074 = vmatprep.subr.bf16.mxu0 %v1202_v2  ;;  %v1215_v20 = vld [vmem:[%s1555_s10 + $0x38] sm:$0xff]   ;;  %v1221_v21 = vld [vmem:[#allocation7 + $0x10] sm:$0xff]   ;;  %v1222_v22 = vld [vmem:[#allocation7 + $0x8] sm:$0xff]  }
  0x66   : > { %v1223_v23 = vld [vmem:[#allocation7] sm:$0xff]  }
  0x67   : > { %1105 = vmatpush3.bf16.msra.mxu1 %v1217_v8  ;;  %v922_v26 = vld [vmem:[%s1654_s2] ss:$0 sm:$0xff] }
  0x68   : > { %1075 = vmatpush3.bf16.msra.mxu0 %v1202_v2  ;;  %1106 = vmatprep.subr.bf16.mxu1 %v1218_v10 }
  0x69   : > { %1076 = vmatprep.subr.bf16.mxu0 %v1203_v3 }
  0x6b   : > { %1107 = vmatpush3.bf16.msra.mxu1 %v1218_v10 }
  0x6c   : > { %1077 = vmatpush3.bf16.msra.mxu0 %v1203_v3  ;;  %1108 = vmatprep.subr.bf16.mxu1 %v1219_v12 }
  0x6d   : > { %1078 = vmatprep.subr.bf16.mxu0 %v1204_v5 }
  0x6f   : > { %1109 = vmatpush3.bf16.msra.mxu1 %v1219_v12 }
  0x70   : > { %1079 = vmatpush3.bf16.msra.mxu0 %v1204_v5  ;;  %1110 = vmatprep.subr.bf16.mxu1 %v1220_v13 }
  0x71   : > { %1080 = vmatprep.subr.bf16.mxu0 %v1205_v6 }
  0x73   : > { %1111 = vmatpush3.bf16.msra.mxu1 %v1220_v13 }
  0x74   : > { %1081 = vmatpush3.bf16.msra.mxu0 %v1205_v6  ;;  %1112 = vmatprep.subr.bf16.mxu1 %v1221_v21 }
  0x75   : > { %1082 = vmatprep.subr.bf16.mxu0 %v1206_v9 }
  0x77   : > { %1113 = vmatpush3.bf16.msra.mxu1 %v1221_v21 }
  0x78   : > { %1083 = vmatpush3.bf16.msra.mxu0 %v1206_v9  ;;  %1114 = vmatprep.subr.bf16.mxu1 %v1222_v22 }
  0x79   : > { %1084 = vmatprep.subr.bf16.mxu0 %v1207_v11 }
  0x7b   : > { %1115 = vmatpush3.bf16.msra.mxu1 %v1222_v22 }
  0x7c   : > { %1085 = vmatpush3.bf16.msra.mxu0 %v1207_v11  ;;  %1116 = vmatprep.subr.bf16.mxu1 %v1223_v23 }
  0x7f   : > { %1087 = vmatmul.mubr.bf16.vlgmr.msra.gmra.mxu0 %v1209_v14  ;;  %1117 = vmatpush3.bf16.msra.mxu1 %v1223_v23 }
  0x80   : > { %1090 = vmatprep.mubr.bf16.mxu0 %v1210_v15 }
  0x87   : > { %1091 = vmatmul.mubr.bf16.gmra.mxu0 %v1211_v16 }
  0x88   : > { %1094 = vmatprep.mubr.bf16.mxu0 %v1212_v17 }
  0x8f   : > { %1095 = vmatmul.mubr.bf16.gmra.mxu0 %v1213_v18  ;;  %v939_v18 = vld [vmem:[%s1656_s4] ss:$0 sm:$0xff] }
  0x90   : > { %1098 = vmatprep.mubr.bf16.mxu0 %v1214_v19 }
  0x97   : > { %1099 = vmatmul.mubr.bf16.gmra.mxu0 %v1215_v20 }
 0x13f   : > { %v1088_v24 = vpop.f32.mrf.mxu0 }
 0x140   : > { %v467_v30 = vadd.f32 %v1088_v24, %v922_v26 }
 0x141   : > { %v458_v25 = vpop.f32.mrf.mxu0 }
 0x142   : > { %v459_v28 = vadd.f32 %v922_v26, %v458_v25  ;;  %v523_v37 = vmax.f32 %v467_v30, 0.0 }
 0x143   : > { %v1089_v27 = vpop.f32.mrf.mxu0 }
 0x144   : > { %v470_v29 = vadd.f32 %v1089_v27, %v922_v26  ;;  %v521_v35 = vmax.f32 %v459_v28, 0.0 }
 0x145   : > { %v461_v31 = vpop.f32.mrf.mxu0 }
 0x146   : > { %v462_v32 = vadd.f32 %v922_v26, %v461_v31  ;;  %v524_v33 = vmax.f32 %v470_v29, 0.0 }
 0x147   : > { %v1092_v34 = vpop.f32.mrf.mxu0 }
 0x148   : > { %v522_v36 = vmax.f32 %v462_v32, 0.0  ;;  %v538_v40 = vpack.c.bf16 %v524_v33, %v523_v37  ;;  %v483_v44 = vadd.f32 %v1092_v34, %v922_v26 }
 0x149   : > { %v474_v38 = vpop.f32.mrf.mxu0 }
 0x14a   : > { %v537_v39 = vpack.c.bf16 %v522_v36, %v521_v35  ;;  %v475_v42 = vadd.f32 %v922_v26, %v474_v38  ;;  %v527_v51 = vmax.f32 %v483_v44, 0.0 }
 0x14b   : > { %v1093_v41 = vpop.f32.mrf.mxu0 }
 0x14c   : > { %v486_v43 = vadd.f32 %v1093_v41, %v922_v26  ;;  %1118 = vmatprep.mubr.bf16.mxu1 %v537_v39  ;;  %v525_v49 = vmax.f32 %v475_v42, 0.0 }
 0x14d   : > { %v477_v45 = vpop.f32.mrf.mxu0  ;;  %1119 = vmatmul.mubr.bf16.vlgmr.msra.gmra.mxu1 %v538_v40 }
 0x14e   : > { %v478_v46 = vadd.f32 %v922_v26, %v477_v45  ;;  %v528_v47 = vmax.f32 %v486_v43, 0.0 }
 0x14f   : > { %v1096_v48 = vpop.f32.mrf.mxu0 }
 0x150   : > { %v526_v50 = vmax.f32 %v478_v46, 0.0  ;;  %v540_v54 = vpack.c.bf16 %v528_v47, %v527_v51  ;;  %v499_v58 = vadd.f32 %v1096_v48, %v922_v26 }
 0x151   : > { %v490_v52 = vpop.f32.mrf.mxu0 }
 0x152   : > { %v539_v53 = vpack.c.bf16 %v526_v50, %v525_v49  ;;  %v491_v56 = vadd.f32 %v922_v26, %v490_v52  ;;  %v531_v1 = vmax.f32 %v499_v58, 0.0 }
 0x153   : > { %v1097_v55 = vpop.f32.mrf.mxu0 }
 0x154   : > { %v502_v57 = vadd.f32 %v1097_v55, %v922_v26  ;;  %1122 = vmatprep.mubr.bf16.mxu1 %v539_v53  ;;  %v529_v63 = vmax.f32 %v491_v56, 0.0 }
 0x155   : > { %v493_v59 = vpop.f32.mrf.mxu0  ;;  %1123 = vmatmul.mubr.bf16.gmra.mxu1 %v540_v54 }
 0x156   : > { %v494_v60 = vadd.f32 %v922_v26, %v493_v59  ;;  %v532_v61 = vmax.f32 %v502_v57, 0.0 }
 0x157   : > { %v1100_v62 = vpop.f32.mrf.mxu0 }
 0x158   : > { %v530_v0 = vmax.f32 %v494_v60, 0.0  ;;  %v542_v4 = vpack.c.bf16 %v532_v61, %v531_v1  ;;  %v515_v8 = vadd.f32 %v1100_v62, %v922_v26 }
 0x159   : > { %v506_v2 = vpop.f32.mrf.mxu0 }
 0x15a   : > { %v541_v3 = vpack.c.bf16 %v530_v0, %v529_v63  ;;  %v507_v6 = vadd.f32 %v922_v26, %v506_v2  ;;  %v535_v14 = vmax.f32 %v515_v8, 0.0 }
 0x15b   : > { %v1101_v5 = vpop.f32.mrf.mxu0 }
 0x15c   : > { %v518_v7 = vadd.f32 %v1101_v5, %v922_v26  ;;  %1126 = vmatprep.mubr.bf16.mxu1 %v541_v3  ;;  %v533_v12 = vmax.f32 %v507_v6, 0.0 }
 0x15d   : > { %v509_v9 = vpop.f32.mrf.mxu0  ;;  %1127 = vmatmul.mubr.bf16.gmra.mxu1 %v542_v4 }
 0x15e   : > { %v510_v10 = vadd.f32 %v922_v26, %v509_v9  ;;  %v536_v11 = vmax.f32 %v518_v7, 0.0 }
 0x160   : > { %v534_v13 = vmax.f32 %v510_v10, 0.0  ;;  %v544_v16 = vpack.c.bf16 %v536_v11, %v535_v14 }
 0x162   : > { %v543_v15 = vpack.c.bf16 %v534_v13, %v533_v12 }
 0x164   : > { %1130 = vmatprep.mubr.bf16.mxu1 %v543_v15 }
 0x165   : > { %1131 = vmatmul.mubr.bf16.gmra.mxu1 %v544_v16 }
 0x20d   : > { %v1120_v17 = vpop.f32.mrf.mxu1 }
 0x20e   : > { %v659_v21 = vadd.f32 %v1120_v17, %v939_v18 }
 0x20f   : > { %v650_v19 = vpop.f32.mrf.mxu1 }
 0x210   : > { %v651_v24 = vadd.f32 %v939_v18, %v650_v19 }
 0x211   : > { %v1121_v20 = vpop.f32.mrf.mxu1 }
 0x212   : > { %v662_v22 = vadd.f32 %v1121_v20, %v939_v18 }
 0x213   : > { %v653_v23 = vpop.f32.mrf.mxu1 }
 0x214   : > { %v999_v25 = vpack.c.bf16 %v662_v22, %v659_v21  ;;  %v654_v26 = vadd.f32 %v939_v18, %v653_v23 }
 0x215   : > { %v1124_v27 = vpop.f32.mrf.mxu1 }
 0x216   : > { %1031 = vst [vmem:[%s1581_s23 + $0x8] sm:$0xff] %v999_v25   ;;  %v994_v28 = vpack.c.bf16 %v654_v26, %v651_v24  ;;  %v675_v31 = vadd.f32 %v1124_v27, %v939_v18 }
 0x217   : > { %v666_v29 = vpop.f32.mrf.mxu1 }
 0x218   : > { %995 = vst [vmem:[%s1581_s23] sm:$0xff] %v994_v28   ;;  %v667_v34 = vadd.f32 %v939_v18, %v666_v29 }
 0x219   : > { %v1125_v30 = vpop.f32.mrf.mxu1 }
 0x21a   : > { %v678_v32 = vadd.f32 %v1125_v30, %v939_v18 }
 0x21b   : > { %v669_v33 = vpop.f32.mrf.mxu1 }
 0x21c   : > { %v1009_v35 = vpack.c.bf16 %v678_v32, %v675_v31  ;;  %v670_v36 = vadd.f32 %v939_v18, %v669_v33 }
 0x21d   : > { %v1128_v37 = vpop.f32.mrf.mxu1 }
 0x21e   : > { %1033 = vst [vmem:[%s1581_s23 + $0x18] sm:$0xff] %v1009_v35   ;;  %v1004_v38 = vpack.c.bf16 %v670_v36, %v667_v34  ;;  %v691_v41 = vadd.f32 %v1128_v37, %v939_v18 }
 0x21f   : > { %v682_v39 = vpop.f32.mrf.mxu1 }
 0x220   : > { %1032 = vst [vmem:[%s1581_s23 + $0x10] sm:$0xff] %v1004_v38   ;;  %v683_v44 = vadd.f32 %v939_v18, %v682_v39 }
 0x221   : > { %v1129_v40 = vpop.f32.mrf.mxu1 }
 0x222   : > { %v694_v42 = vadd.f32 %v1129_v40, %v939_v18 }
 0x223   : > { %v685_v43 = vpop.f32.mrf.mxu1 }
 0x224   : > { %v1019_v45 = vpack.c.bf16 %v694_v42, %v691_v41  ;;  %v686_v46 = vadd.f32 %v939_v18, %v685_v43 }
 0x225   : > { %v1132_v47 = vpop.f32.mrf.mxu1 }
 0x226   : > { %1035 = vst [vmem:[%s1581_s23 + $0x28] sm:$0xff] %v1019_v45   ;;  %v1014_v48 = vpack.c.bf16 %v686_v46, %v683_v44  ;;  %v707_v51 = vadd.f32 %v1132_v47, %v939_v18 }
 0x227   : > { %v698_v49 = vpop.f32.mrf.mxu1 }
 0x228   : > { %1034 = vst [vmem:[%s1581_s23 + $0x20] sm:$0xff] %v1014_v48   ;;  %v699_v54 = vadd.f32 %v939_v18, %v698_v49 }
 0x229   : > { %v1133_v50 = vpop.f32.mrf.mxu1 }
 0x22a   : > { %v710_v52 = vadd.f32 %v1133_v50, %v939_v18 }
 0x22b   : > { %v701_v53 = vpop.f32.mrf.mxu1 }
 0x22c   : > { %v1029_v55 = vpack.c.bf16 %v710_v52, %v707_v51  ;;  %v702_v56 = vadd.f32 %v939_v18, %v701_v53  ;;  %800 = sbr.rel (!%p1669_p0) target bundleno = 588 (0x24c), region = 56 }
 0x22e   : > { %1037 = vst [vmem:[%s1581_s23 + $0x38] sm:$0xff] %v1029_v55   ;;  %v1024_v57 = vpack.c.bf16 %v702_v56, %v699_v54 }
 0x230   : > { %1036 = vst [vmem:[%s1581_s23 + $0x30] sm:$0xff] %v1024_v57  }
 0x231   : > { %s1678_s28 = smov (!%p803_p10, %s802_s28), 16 }
 0x232   : > { %s1595_s14 = sshll.u32 %s1678_s28, 6 }
 0x233   : > { %s807_s15 = ssub.s32 1024, %s1595_s14 }
 0x234   : > { %808 = vsyncadd %s794_s25, %s807_s15  ;;  %p967_p1 = scmp.ne.s32.totalorder %s1595_s14, 0  ;;  %s990_s30 = sshll.u32 %s1433_s22, 10 }
 0x235   : > { %s1605_s11 = scalar_lea.hbm %s1657_s5, %s990_s30  ;;  %s813_s13 = sshll.u32 %s1581_s23, 4  ;;  %s1608_s13 = int_to_ptr.vmem [resolvable:$true] %s813_s13 }
 0x236   : > { %s1302_s10 = scalar_lea.vmem %s1608_s13, %s1595_s14  ;;  %s1379_s29 = smov [#allocation8]  }
 0x237   : > { %p1303_p3 = scmp.ne.s32.totalorder %s1608_s13, %s1302_s10  ;;  %s1306_s7 = sshll.u32 %s1379_s29, 4  ;;  %s1307_s7 = int_to_ptr.vmem [resolvable:$false] %s1306_s7 }
 0x238   : > { %s1308_s22 = scalar_lea.vmem %s1307_s7, 2048  ;;  %p1309_p12 = scmp.lt.s32.totalorder %s1608_s13, %s1307_s7 }
 0x239   : > { %p1304_p7 = pnand %p1303_p3, %p967_p1  ;;  %p1310_p8 = scmp.lt.s32.totalorder %s1308_s22, %s1302_s10 }
 0x23b   : > { %p1305_p9 = pneg %p1304_p7  ;;  %p1311_p4 = por %p1310_p8, %p1309_p12 }
 0x23d   : > { %p1312_p6 = pnand %p1311_p4, %p1305_p9 }
 0x23f   : > { %1315 = shalt.err (!%p1312_p6)
}
 0x240   : > { %s1316_s16 = scalar_lea.hbm %s1605_s11, %s1595_s14  ;;  %s1320_s12 = scalar_lea.hbm %s1657_s5, 2432 }
 0x241   : > { %p1317_p11 = scmp.ne.s32.totalorder %s1605_s11, %s1316_s16  ;;  %p1321_p13 = scmp.lt.s32.totalorder %s1605_s11, %s1657_s5 }
 0x242   : > { %p1322_p0 = scmp.lt.s32.totalorder %s1320_s12, %s1316_s16 }
 0x243   : > { %p1318_p2 = pnand %p1317_p11, %p967_p1 }
 0x244   : > { %p1323_p10 = por %p1322_p0, %p1321_p13 }
 0x245   : > { %p1319_p5 = pneg %p1318_p2 }
 0x247   : > { %p1324_p3 = pnand %p1323_p10, %p1319_p5 }
 0x249   : > { %1327 = shalt.err (!%p1324_p3)
}
 0x24a   : > { %s1380_s30 = smov 64   ;;  %s1381_s26 = smov 4  }
 0x24b   : > { %819 = dma.vmem_to_hbm [thread:$0]  (%p967_p1), %s1608_s13, %s1595_s14, %s1605_s11, %s794_s25, %s1380_s30, %s1380_s30, %s1381_s26  }
 0x24c PF: > { %p1159_p7 = scmp.ge.s32.totalorder %s1370_s21, 2  ;;  %s828_s8 = sand.u32 1, %s1358_s18  }
 0x24d   : > { %p1670_p9 = scmp.ne.s32.totalorder %s1663_s6, 0  ;;  %s829_s10 = scalar_lea.sflag [#allocation4], %s828_s8 }
 0x24f   : > { %p1152_p12 = pnand %p1159_p7, %p1670_p9 }
 0x251   : > { %p1153_p8 = pneg %p1152_p12 }
 0x253   : > { %1353 = dma.done.wait (%p1153_p8), %s829_s10, 1024  }
 0x254   : > { %1355 = vsyncadd (%p1153_p8), %s829_s10, 4294966272  ;;  %p19_p4 = scmp.ge.s32.totalorder %s1437_s24, 5   ;;  %s1671_s18 = smov %s1362_s19 }
 0x255   : > { %s1672_s19 = smov %s1366_s20  ;;  %s1673_s20 = smov %s1449_s27 }
 0x256   : > { %s1674_s21 = smov %s1437_s24  ;;  %21 = sbr.rel (!%p19_p4) target bundleno = 6 (0x6), region = 93 }
 0x25b   :  { %834 = vsyncpa [#allocation3], 1 }
 0x25c   :  { %836 = vsyncpa [#allocation3 + $0x1], 1 }
 0x25d   :  { %837 = vsyncpa [#allocation6], 1 }
 0x25e   :  { %838 = vsyncpa [#allocation4], 1 }
 0x25f   :  { %840 = vsyncpa [#allocation4 + $0x1], 1 }

</bundles_post_ra>
